<compile_context>
chip_gen: v5e
topology: v5e:2x2
jax: 0.10.0
libtpu: 0.0.40
codegen_flags: <defaults>
</compile_context>

<pallas_src>
import functools

import numpy as np
import jax
import jax.numpy as jnp
from jax.experimental import pallas as pl
from jax.experimental.pallas import tpu as pltpu


def _fused_kernel(x_ref, w_ref, b_ref, g_ref, beta_ref, grp_ref, grpT_ref, o_ref,
                  *, tb, w_pix, c):
    """One grid step: TB whole (b, h) image rows = TB*W input tokens.

    x_ref    : (TB*W, C)        input tokens
    w_ref    : (C, 16C)         expand weight (resident)
    b_ref    : (1, 16C)         expand bias
    g_ref    : (1, 16C)         LayerNorm gamma, tiled x16 along lanes
    beta_ref : (1, 16C)         LayerNorm beta,  tiled x16 along lanes
    grp_ref  : (16C, 16)        0/1 indicator: lane j belongs to group j // C
    grpT_ref : (16, 16C)        its transpose
    o_ref    : (TB, 4, W, 4C)   output block (p1 axis = dim 1, (p2, c) = lanes)
    """
    fourc = 4 * c

    # ---- Linear expand on the MXU (f32 accumulation, no operand upcast) ----
    x = x_ref[...]                                                     # (TM, C)
    y = jnp.dot(x, w_ref[...], preferred_element_type=jnp.float32)     # (TM, 16C)
    y = y + b_ref[...]

    # ---- Grouped LayerNorm over each C-sized lane group (eps = 1e-5) ----
    # After the rearrange each lane group (p1, p2) of size C becomes its own
    # output row, so each group is normalized independently.  Group reductions
    # and the broadcast-back are done with small MXU matmuls (no reshapes).
    inv_c = jnp.float32(1.0 / c)
    g_sum = jnp.dot(y, grp_ref[...], preferred_element_type=jnp.float32)           # (TM, 16)
    mean = jnp.dot(g_sum * inv_c, grpT_ref[...], preferred_element_type=jnp.float32)  # (TM, 16C)
    yc = y - mean
    g_var = jnp.dot(yc * yc, grp_ref[...], preferred_element_type=jnp.float32) * inv_c
    var = jnp.dot(g_var, grpT_ref[...], preferred_element_type=jnp.float32)        # (TM, 16C)
    out = yc * jax.lax.rsqrt(var + 1e-5) * g_ref[...] + beta_ref[...]              # (TM, 16C)

    # ---- Rearrange 'b h w (p1 p2 c) -> b (h p1) (w p2) c' as in-VMEM stores ----
    # For row group p1 the lanes [p1*4C, (p1+1)*4C) already hold (p2, c) in the
    # final contiguous order, so each (W, 4C) chunk is stored lane-dense.
    for p1 in range(4):
        chunk = out[:, p1 * fourc:(p1 + 1) * fourc]                    # (TM, 4C)
        for t in range(tb):
            o_ref[t, p1] = chunk[t * w_pix:(t + 1) * w_pix, :].astype(o_ref.dtype)


def _pick_row_tile(bh, w_pix, max_rows=512, max_unroll=64):
    """TB = number of (b, h) rows per grid step: TB | BH, TB*W <= max_rows, 8 | TB*W."""
    best = None
    for t in range(1, min(bh, max_unroll) + 1):
        if bh % t:
            continue
        tm = t * w_pix
        if tm > max_rows:
            break
        if tm % 8 == 0:
            best = t
    if best is None:
        # Fall back to one block covering all rows (block dim == full array dim,
        # which always satisfies the (8, 128) block-shape rule).
        best = bh
    return best


def final_expand_forward(x, params):
    """x: (B, L, C)  ->  (B, 16*L, C).  Fused Linear(C->16C) + rearrange + LayerNorm."""
    B, L, C = x.shape
    H = int(np.sqrt(L))
    W = H
    assert H * W == L, "L must be a perfect square"
    w, b, gamma, beta = params["w"], params["b"], params["gamma"], params["beta"]

    BH = B * H
    TB = _pick_row_tile(BH, W)
    TM = TB * W
    grid = (BH // TB,)

    x2d = x.reshape(B * L, C)
    # LayerNorm params tiled along the 16 channel groups (lane j -> gamma[j % C]).
    g16 = jnp.tile(gamma.reshape(1, C), (1, 16))
    b16 = jnp.tile(beta.reshape(1, C), (1, 16))
    # 0/1 group-indicator matrix: lane j belongs to group j // C.
    grp = (jnp.arange(16 * C)[:, None] // C == jnp.arange(16)[None, :]).astype(jnp.float32)
    grpT = grp.T

    kernel = functools.partial(_fused_kernel, tb=TB, w_pix=W, c=C)

    out4 = pl.pallas_call(
        kernel,
        out_shape=jax.ShapeDtypeStruct((BH, 4, W, 4 * C), x.dtype),
        grid=grid,
        in_specs=[
            pl.BlockSpec((TM, C), lambda i: (i, 0)),          # x rows for this tile
            pl.BlockSpec((C, 16 * C), lambda i: (0, 0)),      # weight, VMEM-resident
            pl.BlockSpec((1, 16 * C), lambda i: (0, 0)),      # bias
            pl.BlockSpec((1, 16 * C), lambda i: (0, 0)),      # gamma (tiled x16)
            pl.BlockSpec((1, 16 * C), lambda i: (0, 0)),      # beta  (tiled x16)
            pl.BlockSpec((16 * C, 16), lambda i: (0, 0)),     # group indicator
            pl.BlockSpec((16, 16 * C), lambda i: (0, 0)),     # its transpose
        ],
        out_specs=pl.BlockSpec((TB, 4, W, 4 * C), lambda i: (i, 0, 0, 0)),
        compiler_params=pltpu.CompilerParams(
            dimension_semantics=("parallel",),        # megacore split on v7x
            vmem_limit_bytes=32 * 1024 * 1024,        # sized for v7x's smaller VMEM
        ),
    )(x2d, w, b, g16, b16, grp, grpT)

    # (BH, 4, W, 4C) row-major is exactly the memory layout of (B, 16L, C) with
    # rows ordered (h, p1, w, p2): pure metadata reshape, no data movement.
    return out4.reshape(B, 16 * L, C)


def init_params(key, channels):
    """Deterministic init mirroring torch defaults (uniform +-1/sqrt(fan_in))."""
    k1, k2 = jax.random.split(key)
    bound = 1.0 / np.sqrt(channels)
    # nn.Linear(channels, 16*channels): torch weight is (16C, C); stored transposed.
    w = jax.random.uniform(k1, (channels, 16 * channels), jnp.float32, -bound, bound)
    b = jax.random.uniform(k2, (1, 16 * channels), jnp.float32, -bound, bound)
    gamma = jnp.ones((1, channels), jnp.float32)   # LayerNorm weight
    beta = jnp.zeros((1, channels), jnp.float32)   # LayerNorm bias
    return {"w": w, "b": b, "gamma": gamma, "beta": beta}


def _reference(x, params):
    """Pure-JAX reference of the PyTorch forward (for a numerical self-check)."""
    B, L, C = x.shape
    H = int(np.sqrt(L))
    W = H
    y = x.reshape(B, H, W, C) @ params["w"] + params["b"].reshape(16 * C)
    y = y.reshape(B, H, W, 4, 4, C)
    y = jnp.transpose(y, (0, 1, 3, 2, 4, 5)).reshape(B, 16 * L, C)
    mean = jnp.mean(y, axis=-1, keepdims=True)
    var = jnp.mean((y - mean) ** 2, axis=-1, keepdims=True)
    yn = (y - mean) * jax.lax.rsqrt(var + 1e-5)
    return yn * params["gamma"].reshape(C) + params["beta"].reshape(C)


if __name__ == "__main__":
    key = jax.random.PRNGKey(0)
    B, C = 2, 4
    H = W = 4
    L = H * W  # 16
    kx, kp = jax.random.split(key)
    x = jax.random.normal(kx, (B, L, C), jnp.float32)
    params = init_params(kp, C)

    out = final_expand_forward(x, params)
    out = jax.block_until_ready(out)
    assert out.shape == (B, 16 * L, C)
    assert out.dtype == jnp.float32

    ref = _reference(x, params)
    max_err = float(jnp.max(jnp.abs(out - ref)))
    assert max_err < 1e-2, f"mismatch vs reference: max_err={max_err}"

    print("KERNEL_OK")
</pallas_src>

<mosaic_0001>
module attributes {stable_mosaic.version = 11 : i64} {
  func.func @_fused_kernel(%arg0: i32, %arg1: memref<32x4xf32, #tpu.memory_space<vmem>>, %arg2: memref<4x64xf32, #tpu.memory_space<vmem>>, %arg3: memref<1x64xf32, #tpu.memory_space<vmem>>, %arg4: memref<1x64xf32, #tpu.memory_space<vmem>>, %arg5: memref<1x64xf32, #tpu.memory_space<vmem>>, %arg6: memref<64x16xf32, #tpu.memory_space<vmem>>, %arg7: memref<16x64xf32, #tpu.memory_space<vmem>>, %arg8: memref<8x4x4x16xf32, #tpu.memory_space<vmem>>) attributes {dimension_semantics = [#tpu.dimension_semantics<parallel>], iteration_bounds = array<i64: 1>, scalar_prefetch = 0 : i64, scratch_operands = 0 : i64, tpu.core_type = #tpu.core_type<tc>, window_params = [{transform_indices = @transform_0, window_bounds = array<i64: 32, 4>}, {pipeline_mode = #tpu.pipeline_mode<synchronous>, transform_indices = @transform_1, window_bounds = array<i64: 4, 64>}, {pipeline_mode = #tpu.pipeline_mode<synchronous>, transform_indices = @transform_2, window_bounds = array<i64: 1, 64>}, {pipeline_mode = #tpu.pipeline_mode<synchronous>, transform_indices = @transform_3, window_bounds = array<i64: 1, 64>}, {pipeline_mode = #tpu.pipeline_mode<synchronous>, transform_indices = @transform_4, window_bounds = array<i64: 1, 64>}, {pipeline_mode = #tpu.pipeline_mode<synchronous>, transform_indices = @transform_5, window_bounds = array<i64: 64, 16>}, {pipeline_mode = #tpu.pipeline_mode<synchronous>, transform_indices = @transform_6, window_bounds = array<i64: 16, 64>}, {transform_indices = @transform_7, window_bounds = array<i64: 8, 4, 4, 16>}]} {
    %c0 = arith.constant 0 : index
    %c0_0 = arith.constant 0 : index
    %0 = vector.load %arg1[%c0, %c0_0] : memref<32x4xf32, #tpu.memory_space<vmem>>, vector<32x4xf32>
    %c0_1 = arith.constant 0 : index
    %c0_2 = arith.constant 0 : index
    %1 = vector.load %arg2[%c0_1, %c0_2] : memref<4x64xf32, #tpu.memory_space<vmem>>, vector<4x64xf32>
    %cst = arith.constant dense<0.000000e+00> : vector<32x64xf32>
    %2 = tpu.matmul %0, %1, %cst {dimension_numbers = #tpu.dot_dimension_numbers<[1], [0], [0], [1], [0, 0, 1, 1], [], []>} : vector<32x4xf32>, vector<4x64xf32>, vector<32x64xf32> -> vector<32x64xf32>
    %c0_3 = arith.constant 0 : index
    %c0_4 = arith.constant 0 : index
    %3 = vector.load %arg3[%c0_3, %c0_4] : memref<1x64xf32, #tpu.memory_space<vmem>>, vector<1x64xf32>
    %4 = vector.broadcast %3 : vector<1x64xf32> to vector<32x64xf32>
    %5 = arith.addf %2, %4 : vector<32x64xf32>
    %c0_5 = arith.constant 0 : index
    %c0_6 = arith.constant 0 : index
    %6 = vector.load %arg6[%c0_5, %c0_6] : memref<64x16xf32, #tpu.memory_space<vmem>>, vector<64x16xf32>
    %cst_7 = arith.constant dense<0.000000e+00> : vector<32x16xf32>
    %7 = tpu.matmul %5, %6, %cst_7 {dimension_numbers = #tpu.dot_dimension_numbers<[1], [0], [0], [1], [0, 0, 1, 1], [], []>} : vector<32x64xf32>, vector<64x16xf32>, vector<32x16xf32> -> vector<32x16xf32>
    %cst_8 = arith.constant 2.500000e-01 : f32
    %8 = vector.broadcast %cst_8 : f32 to vector<32x16xf32>
    %9 = arith.mulf %7, %8 : vector<32x16xf32>
    %c0_9 = arith.constant 0 : index
    %c0_10 = arith.constant 0 : index
    %10 = vector.load %arg7[%c0_9, %c0_10] : memref<16x64xf32, #tpu.memory_space<vmem>>, vector<16x64xf32>
    %cst_11 = arith.constant dense<0.000000e+00> : vector<32x64xf32>
    %11 = tpu.matmul %9, %10, %cst_11 {dimension_numbers = #tpu.dot_dimension_numbers<[1], [0], [0], [1], [0, 0, 1, 1], [], []>} : vector<32x16xf32>, vector<16x64xf32>, vector<32x64xf32> -> vector<32x64xf32>
    %12 = arith.subf %5, %11 : vector<32x64xf32>
    %13 = arith.mulf %12, %12 : vector<32x64xf32>
    %c0_12 = arith.constant 0 : index
    %c0_13 = arith.constant 0 : index
    %14 = vector.load %arg6[%c0_12, %c0_13] : memref<64x16xf32, #tpu.memory_space<vmem>>, vector<64x16xf32>
    %cst_14 = arith.constant dense<0.000000e+00> : vector<32x16xf32>
    %15 = tpu.matmul %13, %14, %cst_14 {dimension_numbers = #tpu.dot_dimension_numbers<[1], [0], [0], [1], [0, 0, 1, 1], [], []>} : vector<32x64xf32>, vector<64x16xf32>, vector<32x16xf32> -> vector<32x16xf32>
    %cst_15 = arith.constant 2.500000e-01 : f32
    %16 = vector.broadcast %cst_15 : f32 to vector<32x16xf32>
    %17 = arith.mulf %15, %16 : vector<32x16xf32>
    %c0_16 = arith.constant 0 : index
    %c0_17 = arith.constant 0 : index
    %18 = vector.load %arg7[%c0_16, %c0_17] : memref<16x64xf32, #tpu.memory_space<vmem>>, vector<16x64xf32>
    %cst_18 = arith.constant dense<0.000000e+00> : vector<32x64xf32>
    %19 = tpu.matmul %17, %18, %cst_18 {dimension_numbers = #tpu.dot_dimension_numbers<[1], [0], [0], [1], [0, 0, 1, 1], [], []>} : vector<32x16xf32>, vector<16x64xf32>, vector<32x64xf32> -> vector<32x64xf32>
    %cst_19 = arith.constant 9.99999974E-6 : f32
    %20 = vector.broadcast %cst_19 : f32 to vector<32x64xf32>
    %21 = arith.addf %19, %20 : vector<32x64xf32>
    %22 = math.rsqrt %21 : vector<32x64xf32>
    %23 = arith.mulf %12, %22 : vector<32x64xf32>
    %c0_20 = arith.constant 0 : index
    %c0_21 = arith.constant 0 : index
    %24 = vector.load %arg4[%c0_20, %c0_21] : memref<1x64xf32, #tpu.memory_space<vmem>>, vector<1x64xf32>
    %25 = vector.broadcast %24 : vector<1x64xf32> to vector<32x64xf32>
    %26 = arith.mulf %23, %25 : vector<32x64xf32>
    %c0_22 = arith.constant 0 : index
    %c0_23 = arith.constant 0 : index
    %27 = vector.load %arg5[%c0_22, %c0_23] : memref<1x64xf32, #tpu.memory_space<vmem>>, vector<1x64xf32>
    %28 = vector.broadcast %27 : vector<1x64xf32> to vector<32x64xf32>
    %29 = arith.addf %26, %28 : vector<32x64xf32>
    %30 = vector.extract_strided_slice %29 {offsets = [0, 0], sizes = [32, 16], strides = [1, 1]} : vector<32x64xf32> to vector<32x16xf32>
    %31 = vector.extract_strided_slice %30 {offsets = [0, 0], sizes = [4, 16], strides = [1, 1]} : vector<32x16xf32> to vector<4x16xf32>
    %c0_24 = arith.constant 0 : index
    %c0_25 = arith.constant 0 : index
    %c0_26 = arith.constant 0 : index
    %c0_27 = arith.constant 0 : index
    %32 = vector.load %arg8[%c0_24, %c0_25, %c0_26, %c0_27] : memref<8x4x4x16xf32, #tpu.memory_space<vmem>>, vector<1x1x4x16xf32>
    %33 = vector.shape_cast %32 : vector<1x1x4x16xf32> to vector<4x16xf32>
    %34 = vector.shape_cast %31 : vector<4x16xf32> to vector<1x1x4x16xf32>
    tpu.vector_store %arg8[%c0_24, %c0_25, %c0_26, %c0_27], %34 {strides = array<i32>} : memref<8x4x4x16xf32, #tpu.memory_space<vmem>>, vector<1x1x4x16xf32>,
    %35 = vector.extract_strided_slice %30 {offsets = [4, 0], sizes = [4, 16], strides = [1, 1]} : vector<32x16xf32> to vector<4x16xf32>
    %c1 = arith.constant 1 : index
    %c0_28 = arith.constant 0 : index
    %c0_29 = arith.constant 0 : index
    %c0_30 = arith.constant 0 : index
    %36 = vector.load %arg8[%c1, %c0_28, %c0_29, %c0_30] : memref<8x4x4x16xf32, #tpu.memory_space<vmem>>, vector<1x1x4x16xf32>
    %37 = vector.shape_cast %36 : vector<1x1x4x16xf32> to vector<4x16xf32>
    %38 = vector.shape_cast %35 : vector<4x16xf32> to vector<1x1x4x16xf32>
    tpu.vector_store %arg8[%c1, %c0_28, %c0_29, %c0_30], %38 {strides = array<i32>} : memref<8x4x4x16xf32, #tpu.memory_space<vmem>>, vector<1x1x4x16xf32>,
    %39 = vector.extract_strided_slice %30 {offsets = [8, 0], sizes = [4, 16], strides = [1, 1]} : vector<32x16xf32> to vector<4x16xf32>
    %c2 = arith.constant 2 : index
    %c0_31 = arith.constant 0 : index
    %c0_32 = arith.constant 0 : index
    %c0_33 = arith.constant 0 : index
    %40 = vector.load %arg8[%c2, %c0_31, %c0_32, %c0_33] : memref<8x4x4x16xf32, #tpu.memory_space<vmem>>, vector<1x1x4x16xf32>
    %41 = vector.shape_cast %40 : vector<1x1x4x16xf32> to vector<4x16xf32>
    %42 = vector.shape_cast %39 : vector<4x16xf32> to vector<1x1x4x16xf32>
    tpu.vector_store %arg8[%c2, %c0_31, %c0_32, %c0_33], %42 {strides = array<i32>} : memref<8x4x4x16xf32, #tpu.memory_space<vmem>>, vector<1x1x4x16xf32>,
    %43 = vector.extract_strided_slice %30 {offsets = [12, 0], sizes = [4, 16], strides = [1, 1]} : vector<32x16xf32> to vector<4x16xf32>
    %c3 = arith.constant 3 : index
    %c0_34 = arith.constant 0 : index
    %c0_35 = arith.constant 0 : index
    %c0_36 = arith.constant 0 : index
    %44 = vector.load %arg8[%c3, %c0_34, %c0_35, %c0_36] : memref<8x4x4x16xf32, #tpu.memory_space<vmem>>, vector<1x1x4x16xf32>
    %45 = vector.shape_cast %44 : vector<1x1x4x16xf32> to vector<4x16xf32>
    %46 = vector.shape_cast %43 : vector<4x16xf32> to vector<1x1x4x16xf32>
    tpu.vector_store %arg8[%c3, %c0_34, %c0_35, %c0_36], %46 {strides = array<i32>} : memref<8x4x4x16xf32, #tpu.memory_space<vmem>>, vector<1x1x4x16xf32>,
    %47 = vector.extract_strided_slice %30 {offsets = [16, 0], sizes = [4, 16], strides = [1, 1]} : vector<32x16xf32> to vector<4x16xf32>
    %c4 = arith.constant 4 : index
    %c0_37 = arith.constant 0 : index
    %c0_38 = arith.constant 0 : index
    %c0_39 = arith.constant 0 : index
    %48 = vector.load %arg8[%c4, %c0_37, %c0_38, %c0_39] : memref<8x4x4x16xf32, #tpu.memory_space<vmem>>, vector<1x1x4x16xf32>
    %49 = vector.shape_cast %48 : vector<1x1x4x16xf32> to vector<4x16xf32>
    %50 = vector.shape_cast %47 : vector<4x16xf32> to vector<1x1x4x16xf32>
    tpu.vector_store %arg8[%c4, %c0_37, %c0_38, %c0_39], %50 {strides = array<i32>} : memref<8x4x4x16xf32, #tpu.memory_space<vmem>>, vector<1x1x4x16xf32>,
    %51 = vector.extract_strided_slice %30 {offsets = [20, 0], sizes = [4, 16], strides = [1, 1]} : vector<32x16xf32> to vector<4x16xf32>
    %c5 = arith.constant 5 : index
    %c0_40 = arith.constant 0 : index
    %c0_41 = arith.constant 0 : index
    %c0_42 = arith.constant 0 : index
    %52 = vector.load %arg8[%c5, %c0_40, %c0_41, %c0_42] : memref<8x4x4x16xf32, #tpu.memory_space<vmem>>, vector<1x1x4x16xf32>
    %53 = vector.shape_cast %52 : vector<1x1x4x16xf32> to vector<4x16xf32>
    %54 = vector.shape_cast %51 : vector<4x16xf32> to vector<1x1x4x16xf32>
    tpu.vector_store %arg8[%c5, %c0_40, %c0_41, %c0_42], %54 {strides = array<i32>} : memref<8x4x4x16xf32, #tpu.memory_space<vmem>>, vector<1x1x4x16xf32>,
    %55 = vector.extract_strided_slice %30 {offsets = [24, 0], sizes = [4, 16], strides = [1, 1]} : vector<32x16xf32> to vector<4x16xf32>
    %c6 = arith.constant 6 : index
    %c0_43 = arith.constant 0 : index
    %c0_44 = arith.constant 0 : index
    %c0_45 = arith.constant 0 : index
    %56 = vector.load %arg8[%c6, %c0_43, %c0_44, %c0_45] : memref<8x4x4x16xf32, #tpu.memory_space<vmem>>, vector<1x1x4x16xf32>
    %57 = vector.shape_cast %56 : vector<1x1x4x16xf32> to vector<4x16xf32>
    %58 = vector.shape_cast %55 : vector<4x16xf32> to vector<1x1x4x16xf32>
    tpu.vector_store %arg8[%c6, %c0_43, %c0_44, %c0_45], %58 {strides = array<i32>} : memref<8x4x4x16xf32, #tpu.memory_space<vmem>>, vector<1x1x4x16xf32>,
    %59 = vector.extract_strided_slice %30 {offsets = [28, 0], sizes = [4, 16], strides = [1, 1]} : vector<32x16xf32> to vector<4x16xf32>
    %c7 = arith.constant 7 : index
    %c0_46 = arith.constant 0 : index
    %c0_47 = arith.constant 0 : index
    %c0_48 = arith.constant 0 : index
    %60 = vector.load %arg8[%c7, %c0_46, %c0_47, %c0_48] : memref<8x4x4x16xf32, #tpu.memory_space<vmem>>, vector<1x1x4x16xf32>
    %61 = vector.shape_cast %60 : vector<1x1x4x16xf32> to vector<4x16xf32>
    %62 = vector.shape_cast %59 : vector<4x16xf32> to vector<1x1x4x16xf32>
    tpu.vector_store %arg8[%c7, %c0_46, %c0_47, %c0_48], %62 {strides = array<i32>} : memref<8x4x4x16xf32, #tpu.memory_space<vmem>>, vector<1x1x4x16xf32>,
    %63 = vector.extract_strided_slice %29 {offsets = [0, 16], sizes = [32, 16], strides = [1, 1]} : vector<32x64xf32> to vector<32x16xf32>
    %64 = vector.extract_strided_slice %63 {offsets = [0, 0], sizes = [4, 16], strides = [1, 1]} : vector<32x16xf32> to vector<4x16xf32>
    %c0_49 = arith.constant 0 : index
    %c1_50 = arith.constant 1 : index
    %c0_51 = arith.constant 0 : index
    %c0_52 = arith.constant 0 : index
    %65 = vector.load %arg8[%c0_49, %c1_50, %c0_51, %c0_52] : memref<8x4x4x16xf32, #tpu.memory_space<vmem>>, vector<1x1x4x16xf32>
    %66 = vector.shape_cast %65 : vector<1x1x4x16xf32> to vector<4x16xf32>
    %67 = vector.shape_cast %64 : vector<4x16xf32> to vector<1x1x4x16xf32>
    tpu.vector_store %arg8[%c0_49, %c1_50, %c0_51, %c0_52], %67 {strides = array<i32>} : memref<8x4x4x16xf32, #tpu.memory_space<vmem>>, vector<1x1x4x16xf32>,
    %68 = vector.extract_strided_slice %63 {offsets = [4, 0], sizes = [4, 16], strides = [1, 1]} : vector<32x16xf32> to vector<4x16xf32>
    %c1_53 = arith.constant 1 : index
    %c1_54 = arith.constant 1 : index
    %c0_55 = arith.constant 0 : index
    %c0_56 = arith.constant 0 : index
    %69 = vector.load %arg8[%c1_53, %c1_54, %c0_55, %c0_56] : memref<8x4x4x16xf32, #tpu.memory_space<vmem>>, vector<1x1x4x16xf32>
    %70 = vector.shape_cast %69 : vector<1x1x4x16xf32> to vector<4x16xf32>
    %71 = vector.shape_cast %68 : vector<4x16xf32> to vector<1x1x4x16xf32>
    tpu.vector_store %arg8[%c1_53, %c1_54, %c0_55, %c0_56], %71 {strides = array<i32>} : memref<8x4x4x16xf32, #tpu.memory_space<vmem>>, vector<1x1x4x16xf32>,
    %72 = vector.extract_strided_slice %63 {offsets = [8, 0], sizes = [4, 16], strides = [1, 1]} : vector<32x16xf32> to vector<4x16xf32>
    %c2_57 = arith.constant 2 : index
    %c1_58 = arith.constant 1 : index
    %c0_59 = arith.constant 0 : index
    %c0_60 = arith.constant 0 : index
    %73 = vector.load %arg8[%c2_57, %c1_58, %c0_59, %c0_60] : memref<8x4x4x16xf32, #tpu.memory_space<vmem>>, vector<1x1x4x16xf32>
    %74 = vector.shape_cast %73 : vector<1x1x4x16xf32> to vector<4x16xf32>
    %75 = vector.shape_cast %72 : vector<4x16xf32> to vector<1x1x4x16xf32>
    tpu.vector_store %arg8[%c2_57, %c1_58, %c0_59, %c0_60], %75 {strides = array<i32>} : memref<8x4x4x16xf32, #tpu.memory_space<vmem>>, vector<1x1x4x16xf32>,
    %76 = vector.extract_strided_slice %63 {offsets = [12, 0], sizes = [4, 16], strides = [1, 1]} : vector<32x16xf32> to vector<4x16xf32>
    %c3_61 = arith.constant 3 : index
    %c1_62 = arith.constant 1 : index
    %c0_63 = arith.constant 0 : index
    %c0_64 = arith.constant 0 : index
    %77 = vector.load %arg8[%c3_61, %c1_62, %c0_63, %c0_64] : memref<8x4x4x16xf32, #tpu.memory_space<vmem>>, vector<1x1x4x16xf32>
    %78 = vector.shape_cast %77 : vector<1x1x4x16xf32> to vector<4x16xf32>
    %79 = vector.shape_cast %76 : vector<4x16xf32> to vector<1x1x4x16xf32>
    tpu.vector_store %arg8[%c3_61, %c1_62, %c0_63, %c0_64], %79 {strides = array<i32>} : memref<8x4x4x16xf32, #tpu.memory_space<vmem>>, vector<1x1x4x16xf32>,
    %80 = vector.extract_strided_slice %63 {offsets = [16, 0], sizes = [4, 16], strides = [1, 1]} : vector<32x16xf32> to vector<4x16xf32>
    %c4_65 = arith.constant 4 : index
    %c1_66 = arith.constant 1 : index
    %c0_67 = arith.constant 0 : index
    %c0_68 = arith.constant 0 : index
    %81 = vector.load %arg8[%c4_65, %c1_66, %c0_67, %c0_68] : memref<8x4x4x16xf32, #tpu.memory_space<vmem>>, vector<1x1x4x16xf32>
    %82 = vector.shape_cast %81 : vector<1x1x4x16xf32> to vector<4x16xf32>
    %83 = vector.shape_cast %80 : vector<4x16xf32> to vector<1x1x4x16xf32>
    tpu.vector_store %arg8[%c4_65, %c1_66, %c0_67, %c0_68], %83 {strides = array<i32>} : memref<8x4x4x16xf32, #tpu.memory_space<vmem>>, vector<1x1x4x16xf32>,
    %84 = vector.extract_strided_slice %63 {offsets = [20, 0], sizes = [4, 16], strides = [1, 1]} : vector<32x16xf32> to vector<4x16xf32>
    %c5_69 = arith.constant 5 : index
    %c1_70 = arith.constant 1 : index
    %c0_71 = arith.constant 0 : index
    %c0_72 = arith.constant 0 : index
    %85 = vector.load %arg8[%c5_69, %c1_70, %c0_71, %c0_72] : memref<8x4x4x16xf32, #tpu.memory_space<vmem>>, vector<1x1x4x16xf32>
    %86 = vector.shape_cast %85 : vector<1x1x4x16xf32> to vector<4x16xf32>
    %87 = vector.shape_cast %84 : vector<4x16xf32> to vector<1x1x4x16xf32>
    tpu.vector_store %arg8[%c5_69, %c1_70, %c0_71, %c0_72], %87 {strides = array<i32>} : memref<8x4x4x16xf32, #tpu.memory_space<vmem>>, vector<1x1x4x16xf32>,
    %88 = vector.extract_strided_slice %63 {offsets = [24, 0], sizes = [4, 16], strides = [1, 1]} : vector<32x16xf32> to vector<4x16xf32>
    %c6_73 = arith.constant 6 : index
    %c1_74 = arith.constant 1 : index
    %c0_75 = arith.constant 0 : index
    %c0_76 = arith.constant 0 : index
    %89 = vector.load %arg8[%c6_73, %c1_74, %c0_75, %c0_76] : memref<8x4x4x16xf32, #tpu.memory_space<vmem>>, vector<1x1x4x16xf32>
    %90 = vector.shape_cast %89 : vector<1x1x4x16xf32> to vector<4x16xf32>
    %91 = vector.shape_cast %88 : vector<4x16xf32> to vector<1x1x4x16xf32>
    tpu.vector_store %arg8[%c6_73, %c1_74, %c0_75, %c0_76], %91 {strides = array<i32>} : memref<8x4x4x16xf32, #tpu.memory_space<vmem>>, vector<1x1x4x16xf32>,
    %92 = vector.extract_strided_slice %63 {offsets = [28, 0], sizes = [4, 16], strides = [1, 1]} : vector<32x16xf32> to vector<4x16xf32>
    %c7_77 = arith.constant 7 : index
    %c1_78 = arith.constant 1 : index
    %c0_79 = arith.constant 0 : index
    %c0_80 = arith.constant 0 : index
    %93 = vector.load %arg8[%c7_77, %c1_78, %c0_79, %c0_80] : memref<8x4x4x16xf32, #tpu.memory_space<vmem>>, vector<1x1x4x16xf32>
    %94 = vector.shape_cast %93 : vector<1x1x4x16xf32> to vector<4x16xf32>
    %95 = vector.shape_cast %92 : vector<4x16xf32> to vector<1x1x4x16xf32>
    tpu.vector_store %arg8[%c7_77, %c1_78, %c0_79, %c0_80], %95 {strides = array<i32>} : memref<8x4x4x16xf32, #tpu.memory_space<vmem>>, vector<1x1x4x16xf32>,
    %96 = vector.extract_strided_slice %29 {offsets = [0, 32], sizes = [32, 16], strides = [1, 1]} : vector<32x64xf32> to vector<32x16xf32>
    %97 = vector.extract_strided_slice %96 {offsets = [0, 0], sizes = [4, 16], strides = [1, 1]} : vector<32x16xf32> to vector<4x16xf32>
    %c0_81 = arith.constant 0 : index
    %c2_82 = arith.constant 2 : index
    %c0_83 = arith.constant 0 : index
    %c0_84 = arith.constant 0 : index
    %98 = vector.load %arg8[%c0_81, %c2_82, %c0_83, %c0_84] : memref<8x4x4x16xf32, #tpu.memory_space<vmem>>, vector<1x1x4x16xf32>
    %99 = vector.shape_cast %98 : vector<1x1x4x16xf32> to vector<4x16xf32>
    %100 = vector.shape_cast %97 : vector<4x16xf32> to vector<1x1x4x16xf32>
    tpu.vector_store %arg8[%c0_81, %c2_82, %c0_83, %c0_84], %100 {strides = array<i32>} : memref<8x4x4x16xf32, #tpu.memory_space<vmem>>, vector<1x1x4x16xf32>,
    %101 = vector.extract_strided_slice %96 {offsets = [4, 0], sizes = [4, 16], strides = [1, 1]} : vector<32x16xf32> to vector<4x16xf32>
    %c1_85 = arith.constant 1 : index
    %c2_86 = arith.constant 2 : index
    %c0_87 = arith.constant 0 : index
    %c0_88 = arith.constant 0 : index
    %102 = vector.load %arg8[%c1_85, %c2_86, %c0_87, %c0_88] : memref<8x4x4x16xf32, #tpu.memory_space<vmem>>, vector<1x1x4x16xf32>
    %103 = vector.shape_cast %102 : vector<1x1x4x16xf32> to vector<4x16xf32>
    %104 = vector.shape_cast %101 : vector<4x16xf32> to vector<1x1x4x16xf32>
    tpu.vector_store %arg8[%c1_85, %c2_86, %c0_87, %c0_88], %104 {strides = array<i32>} : memref<8x4x4x16xf32, #tpu.memory_space<vmem>>, vector<1x1x4x16xf32>,
    %105 = vector.extract_strided_slice %96 {offsets = [8, 0], sizes = [4, 16], strides = [1, 1]} : vector<32x16xf32> to vector<4x16xf32>
    %c2_89 = arith.constant 2 : index
    %c2_90 = arith.constant 2 : index
    %c0_91 = arith.constant 0 : index
    %c0_92 = arith.constant 0 : index
    %106 = vector.load %arg8[%c2_89, %c2_90, %c0_91, %c0_92] : memref<8x4x4x16xf32, #tpu.memory_space<vmem>>, vector<1x1x4x16xf32>
    %107 = vector.shape_cast %106 : vector<1x1x4x16xf32> to vector<4x16xf32>
    %108 = vector.shape_cast %105 : vector<4x16xf32> to vector<1x1x4x16xf32>
    tpu.vector_store %arg8[%c2_89, %c2_90, %c0_91, %c0_92], %108 {strides = array<i32>} : memref<8x4x4x16xf32, #tpu.memory_space<vmem>>, vector<1x1x4x16xf32>,
    %109 = vector.extract_strided_slice %96 {offsets = [12, 0], sizes = [4, 16], strides = [1, 1]} : vector<32x16xf32> to vector<4x16xf32>
    %c3_93 = arith.constant 3 : index
    %c2_94 = arith.constant 2 : index
    %c0_95 = arith.constant 0 : index
    %c0_96 = arith.constant 0 : index
    %110 = vector.load %arg8[%c3_93, %c2_94, %c0_95, %c0_96] : memref<8x4x4x16xf32, #tpu.memory_space<vmem>>, vector<1x1x4x16xf32>
    %111 = vector.shape_cast %110 : vector<1x1x4x16xf32> to vector<4x16xf32>
    %112 = vector.shape_cast %109 : vector<4x16xf32> to vector<1x1x4x16xf32>
    tpu.vector_store %arg8[%c3_93, %c2_94, %c0_95, %c0_96], %112 {strides = array<i32>} : memref<8x4x4x16xf32, #tpu.memory_space<vmem>>, vector<1x1x4x16xf32>,
    %113 = vector.extract_strided_slice %96 {offsets = [16, 0], sizes = [4, 16], strides = [1, 1]} : vector<32x16xf32> to vector<4x16xf32>
    %c4_97 = arith.constant 4 : index
    %c2_98 = arith.constant 2 : index
    %c0_99 = arith.constant 0 : index
    %c0_100 = arith.constant 0 : index
    %114 = vector.load %arg8[%c4_97, %c2_98, %c0_99, %c0_100] : memref<8x4x4x16xf32, #tpu.memory_space<vmem>>, vector<1x1x4x16xf32>
    %115 = vector.shape_cast %114 : vector<1x1x4x16xf32> to vector<4x16xf32>
    %116 = vector.shape_cast %113 : vector<4x16xf32> to vector<1x1x4x16xf32>
    tpu.vector_store %arg8[%c4_97, %c2_98, %c0_99, %c0_100], %116 {strides = array<i32>} : memref<8x4x4x16xf32, #tpu.memory_space<vmem>>, vector<1x1x4x16xf32>,
    %117 = vector.extract_strided_slice %96 {offsets = [20, 0], sizes = [4, 16], strides = [1, 1]} : vector<32x16xf32> to vector<4x16xf32>
    %c5_101 = arith.constant 5 : index
    %c2_102 = arith.constant 2 : index
    %c0_103 = arith.constant 0 : index
    %c0_104 = arith.constant 0 : index
    %118 = vector.load %arg8[%c5_101, %c2_102, %c0_103, %c0_104] : memref<8x4x4x16xf32, #tpu.memory_space<vmem>>, vector<1x1x4x16xf32>
    %119 = vector.shape_cast %118 : vector<1x1x4x16xf32> to vector<4x16xf32>
    %120 = vector.shape_cast %117 : vector<4x16xf32> to vector<1x1x4x16xf32>
    tpu.vector_store %arg8[%c5_101, %c2_102, %c0_103, %c0_104], %120 {strides = array<i32>} : memref<8x4x4x16xf32, #tpu.memory_space<vmem>>, vector<1x1x4x16xf32>,
    %121 = vector.extract_strided_slice %96 {offsets = [24, 0], sizes = [4, 16], strides = [1, 1]} : vector<32x16xf32> to vector<4x16xf32>
    %c6_105 = arith.constant 6 : index
    %c2_106 = arith.constant 2 : index
    %c0_107 = arith.constant 0 : index
    %c0_108 = arith.constant 0 : index
    %122 = vector.load %arg8[%c6_105, %c2_106, %c0_107, %c0_108] : memref<8x4x4x16xf32, #tpu.memory_space<vmem>>, vector<1x1x4x16xf32>
    %123 = vector.shape_cast %122 : vector<1x1x4x16xf32> to vector<4x16xf32>
    %124 = vector.shape_cast %121 : vector<4x16xf32> to vector<1x1x4x16xf32>
    tpu.vector_store %arg8[%c6_105, %c2_106, %c0_107, %c0_108], %124 {strides = array<i32>} : memref<8x4x4x16xf32, #tpu.memory_space<vmem>>, vector<1x1x4x16xf32>,
    %125 = vector.extract_strided_slice %96 {offsets = [28, 0], sizes = [4, 16], strides = [1, 1]} : vector<32x16xf32> to vector<4x16xf32>
    %c7_109 = arith.constant 7 : index
    %c2_110 = arith.constant 2 : index
    %c0_111 = arith.constant 0 : index
    %c0_112 = arith.constant 0 : index
    %126 = vector.load %arg8[%c7_109, %c2_110, %c0_111, %c0_112] : memref<8x4x4x16xf32, #tpu.memory_space<vmem>>, vector<1x1x4x16xf32>
    %127 = vector.shape_cast %126 : vector<1x1x4x16xf32> to vector<4x16xf32>
    %128 = vector.shape_cast %125 : vector<4x16xf32> to vector<1x1x4x16xf32>
    tpu.vector_store %arg8[%c7_109, %c2_110, %c0_111, %c0_112], %128 {strides = array<i32>} : memref<8x4x4x16xf32, #tpu.memory_space<vmem>>, vector<1x1x4x16xf32>,
    %129 = vector.extract_strided_slice %29 {offsets = [0, 48], sizes = [32, 16], strides = [1, 1]} : vector<32x64xf32> to vector<32x16xf32>
    %130 = vector.extract_strided_slice %129 {offsets = [0, 0], sizes = [4, 16], strides = [1, 1]} : vector<32x16xf32> to vector<4x16xf32>
    %c0_113 = arith.constant 0 : index
    %c3_114 = arith.constant 3 : index
    %c0_115 = arith.constant 0 : index
    %c0_116 = arith.constant 0 : index
    %131 = vector.load %arg8[%c0_113, %c3_114, %c0_115, %c0_116] : memref<8x4x4x16xf32, #tpu.memory_space<vmem>>, vector<1x1x4x16xf32>
    %132 = vector.shape_cast %131 : vector<1x1x4x16xf32> to vector<4x16xf32>
    %133 = vector.shape_cast %130 : vector<4x16xf32> to vector<1x1x4x16xf32>
    tpu.vector_store %arg8[%c0_113, %c3_114, %c0_115, %c0_116], %133 {strides = array<i32>} : memref<8x4x4x16xf32, #tpu.memory_space<vmem>>, vector<1x1x4x16xf32>,
    %134 = vector.extract_strided_slice %129 {offsets = [4, 0], sizes = [4, 16], strides = [1, 1]} : vector<32x16xf32> to vector<4x16xf32>
    %c1_117 = arith.constant 1 : index
    %c3_118 = arith.constant 3 : index
    %c0_119 = arith.constant 0 : index
    %c0_120 = arith.constant 0 : index
    %135 = vector.load %arg8[%c1_117, %c3_118, %c0_119, %c0_120] : memref<8x4x4x16xf32, #tpu.memory_space<vmem>>, vector<1x1x4x16xf32>
    %136 = vector.shape_cast %135 : vector<1x1x4x16xf32> to vector<4x16xf32>
    %137 = vector.shape_cast %134 : vector<4x16xf32> to vector<1x1x4x16xf32>
    tpu.vector_store %arg8[%c1_117, %c3_118, %c0_119, %c0_120], %137 {strides = array<i32>} : memref<8x4x4x16xf32, #tpu.memory_space<vmem>>, vector<1x1x4x16xf32>,
    %138 = vector.extract_strided_slice %129 {offsets = [8, 0], sizes = [4, 16], strides = [1, 1]} : vector<32x16xf32> to vector<4x16xf32>
    %c2_121 = arith.constant 2 : index
    %c3_122 = arith.constant 3 : index
    %c0_123 = arith.constant 0 : index
    %c0_124 = arith.constant 0 : index
    %139 = vector.load %arg8[%c2_121, %c3_122, %c0_123, %c0_124] : memref<8x4x4x16xf32, #tpu.memory_space<vmem>>, vector<1x1x4x16xf32>
    %140 = vector.shape_cast %139 : vector<1x1x4x16xf32> to vector<4x16xf32>
    %141 = vector.shape_cast %138 : vector<4x16xf32> to vector<1x1x4x16xf32>
    tpu.vector_store %arg8[%c2_121, %c3_122, %c0_123, %c0_124], %141 {strides = array<i32>} : memref<8x4x4x16xf32, #tpu.memory_space<vmem>>, vector<1x1x4x16xf32>,
    %142 = vector.extract_strided_slice %129 {offsets = [12, 0], sizes = [4, 16], strides = [1, 1]} : vector<32x16xf32> to vector<4x16xf32>
    %c3_125 = arith.constant 3 : index
    %c3_126 = arith.constant 3 : index
    %c0_127 = arith.constant 0 : index
    %c0_128 = arith.constant 0 : index
    %143 = vector.load %arg8[%c3_125, %c3_126, %c0_127, %c0_128] : memref<8x4x4x16xf32, #tpu.memory_space<vmem>>, vector<1x1x4x16xf32>
    %144 = vector.shape_cast %143 : vector<1x1x4x16xf32> to vector<4x16xf32>
    %145 = vector.shape_cast %142 : vector<4x16xf32> to vector<1x1x4x16xf32>
    tpu.vector_store %arg8[%c3_125, %c3_126, %c0_127, %c0_128], %145 {strides = array<i32>} : memref<8x4x4x16xf32, #tpu.memory_space<vmem>>, vector<1x1x4x16xf32>,
    %146 = vector.extract_strided_slice %129 {offsets = [16, 0], sizes = [4, 16], strides = [1, 1]} : vector<32x16xf32> to vector<4x16xf32>
    %c4_129 = arith.constant 4 : index
    %c3_130 = arith.constant 3 : index
    %c0_131 = arith.constant 0 : index
    %c0_132 = arith.constant 0 : index
    %147 = vector.load %arg8[%c4_129, %c3_130, %c0_131, %c0_132] : memref<8x4x4x16xf32, #tpu.memory_space<vmem>>, vector<1x1x4x16xf32>
    %148 = vector.shape_cast %147 : vector<1x1x4x16xf32> to vector<4x16xf32>
    %149 = vector.shape_cast %146 : vector<4x16xf32> to vector<1x1x4x16xf32>
    tpu.vector_store %arg8[%c4_129, %c3_130, %c0_131, %c0_132], %149 {strides = array<i32>} : memref<8x4x4x16xf32, #tpu.memory_space<vmem>>, vector<1x1x4x16xf32>,
    %150 = vector.extract_strided_slice %129 {offsets = [20, 0], sizes = [4, 16], strides = [1, 1]} : vector<32x16xf32> to vector<4x16xf32>
    %c5_133 = arith.constant 5 : index
    %c3_134 = arith.constant 3 : index
    %c0_135 = arith.constant 0 : index
    %c0_136 = arith.constant 0 : index
    %151 = vector.load %arg8[%c5_133, %c3_134, %c0_135, %c0_136] : memref<8x4x4x16xf32, #tpu.memory_space<vmem>>, vector<1x1x4x16xf32>
    %152 = vector.shape_cast %151 : vector<1x1x4x16xf32> to vector<4x16xf32>
    %153 = vector.shape_cast %150 : vector<4x16xf32> to vector<1x1x4x16xf32>
    tpu.vector_store %arg8[%c5_133, %c3_134, %c0_135, %c0_136], %153 {strides = array<i32>} : memref<8x4x4x16xf32, #tpu.memory_space<vmem>>, vector<1x1x4x16xf32>,
    %154 = vector.extract_strided_slice %129 {offsets = [24, 0], sizes = [4, 16], strides = [1, 1]} : vector<32x16xf32> to vector<4x16xf32>
    %c6_137 = arith.constant 6 : index
    %c3_138 = arith.constant 3 : index
    %c0_139 = arith.constant 0 : index
    %c0_140 = arith.constant 0 : index
    %155 = vector.load %arg8[%c6_137, %c3_138, %c0_139, %c0_140] : memref<8x4x4x16xf32, #tpu.memory_space<vmem>>, vector<1x1x4x16xf32>
    %156 = vector.shape_cast %155 : vector<1x1x4x16xf32> to vector<4x16xf32>
    %157 = vector.shape_cast %154 : vector<4x16xf32> to vector<1x1x4x16xf32>
    tpu.vector_store %arg8[%c6_137, %c3_138, %c0_139, %c0_140], %157 {strides = array<i32>} : memref<8x4x4x16xf32, #tpu.memory_space<vmem>>, vector<1x1x4x16xf32>,
    %158 = vector.extract_strided_slice %129 {offsets = [28, 0], sizes = [4, 16], strides = [1, 1]} : vector<32x16xf32> to vector<4x16xf32>
    %c7_141 = arith.constant 7 : index
    %c3_142 = arith.constant 3 : index
    %c0_143 = arith.constant 0 : index
    %c0_144 = arith.constant 0 : index
    %159 = vector.load %arg8[%c7_141, %c3_142, %c0_143, %c0_144] : memref<8x4x4x16xf32, #tpu.memory_space<vmem>>, vector<1x1x4x16xf32>
    %160 = vector.shape_cast %159 : vector<1x1x4x16xf32> to vector<4x16xf32>
    %161 = vector.shape_cast %158 : vector<4x16xf32> to vector<1x1x4x16xf32>
    tpu.vector_store %arg8[%c7_141, %c3_142, %c0_143, %c0_144], %161 {strides = array<i32>} : memref<8x4x4x16xf32, #tpu.memory_space<vmem>>, vector<1x1x4x16xf32>,
    return
  }
  func.func @transform_0(%arg0: i32) -> (i32, i32) {
    %c0_i32 = arith.constant 0 : i32
    %c0_i32_0 = arith.constant 0 : i32
    return %arg0, %c0_i32 : i32, i32
  }
  func.func @transform_1(%arg0: i32) -> (i32, i32) {
    %c0_i32 = arith.constant 0 : i32
    %c0_i32_0 = arith.constant 0 : i32
    %c0_i32_1 = arith.constant 0 : i32
    return %c0_i32, %c0_i32_0 : i32, i32
  }
  func.func @transform_2(%arg0: i32) -> (i32, i32) {
    %c0_i32 = arith.constant 0 : i32
    %c0_i32_0 = arith.constant 0 : i32
    %c0_i32_1 = arith.constant 0 : i32
    return %c0_i32, %c0_i32_0 : i32, i32
  }
  func.func @transform_3(%arg0: i32) -> (i32, i32) {
    %c0_i32 = arith.constant 0 : i32
    %c0_i32_0 = arith.constant 0 : i32
    %c0_i32_1 = arith.constant 0 : i32
    return %c0_i32, %c0_i32_0 : i32, i32
  }
  func.func @transform_4(%arg0: i32) -> (i32, i32) {
    %c0_i32 = arith.constant 0 : i32
    %c0_i32_0 = arith.constant 0 : i32
    %c0_i32_1 = arith.constant 0 : i32
    return %c0_i32, %c0_i32_0 : i32, i32
  }
  func.func @transform_5(%arg0: i32) -> (i32, i32) {
    %c0_i32 = arith.constant 0 : i32
    %c0_i32_0 = arith.constant 0 : i32
    %c0_i32_1 = arith.constant 0 : i32
    return %c0_i32, %c0_i32_0 : i32, i32
  }
  func.func @transform_6(%arg0: i32) -> (i32, i32) {
    %c0_i32 = arith.constant 0 : i32
    %c0_i32_0 = arith.constant 0 : i32
    %c0_i32_1 = arith.constant 0 : i32
    return %c0_i32, %c0_i32_0 : i32, i32
  }
  func.func @transform_7(%arg0: i32) -> (i32, i32, i32, i32) {
    %c0_i32 = arith.constant 0 : i32
    %c0_i32_0 = arith.constant 0 : i32
    %c0_i32_1 = arith.constant 0 : i32
    %c0_i32_2 = arith.constant 0 : i32
    return %arg0, %c0_i32, %c0_i32_0, %c0_i32_1 : i32, i32, i32, i32
  }
}

</mosaic_0001>

<bundles_post_ra>
// kernel: tpu_custom_call.1
= control target key start
LH: loop header
LB: loop body
LE: loop exit
PB: predicated region body
PF: predicated region fallthrough
CT: control target
= control target key end

     0   :  { %vm49_vm0 = vcmask 1043456   ;;  %vm36_vm1 = vcmask 31744   ;;  %s710_s0 = inlined_call_operand.vmem [shape: f32[32,4], index: 0, kind: input, shape index: {}]   ;;  %s711_s1 = inlined_call_operand.vmem [shape: f32[4,64], index: 1, kind: input, shape index: {}]   ;;  %s712_s2 = inlined_call_operand.vmem [shape: f32[1,64], index: 2, kind: input, shape index: {}]   ;;  %s713_s3 = inlined_call_operand.vmem [shape: f32[1,64], index: 3, kind: input, shape index: {}]   ;;  %s714_s4 = inlined_call_operand.vmem [shape: f32[1,64], index: 4, kind: input, shape index: {}]   ;;  %s715_s5 = inlined_call_operand.vmem [shape: f32[64,16], index: 5, kind: input, shape index: {}]   ;;  %s716_s6 = inlined_call_operand.vmem [shape: f32[16,64], index: 6, kind: input, shape index: {}]   ;;  %s717_s7 = inlined_call_operand.hbm [shape: f32[8,4,4,16], index: 7, kind: output, shape index: {}]  }
   0x1   :  { %v31_v0 = vld [vmem:[%s711_s1] sm:$0xf]  ;;  %v29_v2 = vld [vmem:[%s710_s0 + $0x10] sm:$0xff]  ;;  %v89_v3 = vld [vmem:[%s715_s5 + $0x38] sm:$0xff] }
   0x2   :  { %v27_v1 = vld [vmem:[%s710_s0] sm:$0xff]  ;;  %457 = vmatpush.msk.msra.mxu0 %vm49_vm0, %v31_v0  ;;  %478 = vmatpush.msk.msra.mxu2 %vm49_vm0, %v31_v0  ;;  %v88_v4 = vld [vmem:[%s715_s5 + $0x30] sm:$0xff]  ;;  %v87_v5 = vld [vmem:[%s715_s5 + $0x28] sm:$0xff] }
   0x3   :  { %458 = vmatmul.msk.f32.vlgmr.msra.gmra.mxu0 %vm36_vm1, %v27_v1  ;;  %460 = vmatmul.msk.f32.vlgmr.msra.gmra.mxu2 %vm36_vm1, %v29_v2 }
   0x4   :  { %111 = vmatpush.msra.mxu1 %v89_v3  ;;  %208 = vmatpush.msra.mxu3 %v89_v3 }
   0x6   :  { %112 = vmatpush.msra.mxu1 %v88_v4  ;;  %209 = vmatpush.msra.mxu3 %v88_v4 }
   0x7   :  { %12 = vsyncpa [#allocation3], 0  ;;  %v86_v6 = vld [vmem:[%s715_s5 + $0x20] sm:$0xff]  ;;  %v28_v7 = vld [vmem:[%s710_s0 + $0x8] sm:$0xff]  ;;  %vm90_vm2 = vcmask 523264   ;;  %vm138_vm3 = vcmask 130048  }
   0x8   :  { %v30_v8 = vld [vmem:[%s710_s0 + $0x18] sm:$0xff]  ;;  %113 = vmatpush.msra.mxu1 %v87_v5  ;;  %210 = vmatpush.msra.mxu3 %v87_v5  ;;  %v84_v10 = vld [vmem:[%s715_s5 + $0x10] sm:$0xff]  ;;  %v83_v11 = vld [vmem:[%s715_s5 + $0x8] sm:$0xff]  ;;  %vm334_vm8 = vcmask 125952   ;;  %vm337_vm9 = vcmask 130052   ;;  %s524_s1 = smov 80  }
   0x9   :  { %v85_v9 = vld [vmem:[%s715_s5 + $0x18] sm:$0xff]  ;;  %v82_v12 = vld [vmem:[%s715_s5] sm:$0xff]  ;;  %v137_v13 = vld [vmem:[%s716_s6 + $0x8] sm:$0xff]  ;;  %s525_s9 = smov [#allocation2]   ;;  %s445_s13 = sshll.u32 %s717_s7, 4  ;;  %s446_s13 = int_to_ptr.hbm [resolvable:$true] %s445_s13 }
   0xa   :  { %114 = vmatpush.msra.mxu1 %v86_v6  ;;  %211 = vmatpush.msra.mxu3 %v86_v6  ;;  %v136_v14 = vld [vmem:[%s716_s6] sm:$0xff]  ;;  %s443_s10 = sshll.u32 %s525_s9, 4  ;;  %s526_s14 = smov 64   ;;  %s444_s10 = int_to_ptr.vmem [resolvable:$true] %s443_s10 }
   0xb   :  { %459 = vmatmul.msk.f32.gmra.mxu0 %vm36_vm1, %v28_v7  ;;  %461 = vmatmul.msk.f32.gmra.mxu2 %vm36_vm1, %v30_v8  ;;  %v485_v15 = vld [vmem:[%s712_s2] ss:$0 sm:$0xff]  ;;  %s527_s15 = smov 4  }
   0xc   :  { %115 = vmatpush.msra.mxu1 %v85_v9  ;;  %212 = vmatpush.msra.mxu3 %v85_v9  ;;  %v651_v2 = vld [vmem:[%s713_s3] ss:$0 sm:$0xff]  ;;  %s522_s3 = smov 96  }
   0xd   :  { %165 = vmatpush.msrb.mxu2 %v137_v13  ;;  %259 = vmatpush.msrb.mxu0 %v137_v13  ;;  %v487_v6 = vld [vmem:[%s714_s4] ss:$0 sm:$0xff]  ;;  %s523_s4 = smov 112  }
   0xe   :  { %116 = vmatpush.msra.mxu1 %v84_v10  ;;  %213 = vmatpush.msra.mxu3 %v84_v10 }
   0xf   :  { %166 = vmatpush.msrb.mxu2 %v136_v14  ;;  %260 = vmatpush.msrb.mxu0 %v136_v14 }
  0x10   :  { %117 = vmatpush.msra.mxu1 %v83_v11  ;;  %214 = vmatpush.msra.mxu3 %v83_v11 }
  0x12   :  { %118 = vmatpush.msra.mxu1 %v82_v12  ;;  %215 = vmatpush.msra.mxu3 %v82_v12 }
  0x80   :  { %v70_v16 = vpop.f32.mrf.mxu0 }
  0x81   :  { %v71_v17 = vadd.f32 %v485_v15, %v70_v16 }
  0x83   :  { %462 = vmatmul.msk.f32.vlgmr.msra.gmra.mxu1 %vm90_vm2, %v71_v17 }
  0x86   :  { %v76_v20 = vpop.f32.mrf.mxu2 }
  0x87   :  { %v77_v21 = vadd.f32 %v485_v15, %v76_v20 }
  0x88   :  { %v73_v18 = vpop.f32.mrf.mxu0 }
  0x89   :  { %v74_v19 = vadd.f32 %v485_v15, %v73_v18 }
  0x8b   :  { %463 = vmatmul.msk.f32.gmra.mxu1 %vm90_vm2, %v74_v19 }
  0x8e   :  { %v79_v22 = vpop.f32.mrf.mxu2 }
  0x8f   :  { %v80_v23 = vadd.f32 %v485_v15, %v79_v22 }
  0x93   :  { %464 = vmatmul.msk.f32.gmra.mxu1 %vm90_vm2, %v77_v21 }
  0x9b   :  { %465 = vmatmul.msk.f32.gmra.mxu1 %vm90_vm2, %v80_v23 }
 0x100   :  { %v120_v24 = vpop.f32.mrf.mxu1 }
 0x101   :  { %v132_v25 = vmul.f32 0.25, %v120_v24 }
 0x103   :  { %466 = vmatmul.msk.f32.vlgmr.msrb.gmra.mxu2 %vm138_vm3, %v132_v25 }
 0x108   :  { %v123_v26 = vpop.f32.mrf.mxu1 }
 0x109   :  { %v133_v27 = vmul.f32 0.25, %v123_v26 }
 0x10b   :  { %467 = vmatmul.msk.f32.gmra.mxu2 %vm138_vm3, %v133_v27 }
 0x110   :  { %v126_v28 = vpop.f32.mrf.mxu1 }
 0x111   :  { %v134_v29 = vmul.f32 0.25, %v126_v28 }
 0x113   :  { %468 = vmatmul.msk.f32.gmra.mxu2 %vm138_vm3, %v134_v29 }
 0x118   :  { %v129_v30 = vpop.f32.mrf.mxu1 }
 0x119   :  { %v135_v31 = vmul.f32 0.25, %v129_v30 }
 0x11b   :  { %469 = vmatmul.msk.f32.gmra.mxu2 %vm138_vm3, %v135_v31 }
 0x186   :  { %v168_v32 = vpop.f32.mrf.mxu2 }
 0x187   :  { %v180_v33 = vsub.f32 %v71_v17, %v168_v32 }
 0x189   :  { %v184_v34 = vmul.f32 %v180_v33, %v180_v33 }
 0x18b   :  { %470 = vmatmul.msk.f32.vlgmr.msra.gmra.mxu3 %vm90_vm2, %v184_v34 }
 0x18e   :  { %v171_v35 = vpop.f32.mrf.mxu2 }
 0x18f   :  { %v629_v36 = vsub.f32 %v74_v19, %v171_v35 }
 0x191   :  { %v185_v37 = vmul.f32 %v629_v36, %v629_v36 }
 0x193   :  { %471 = vmatmul.msk.f32.gmra.mxu3 %vm90_vm2, %v185_v37 }
 0x196   :  { %v174_v38 = vpop.f32.mrf.mxu2 }
 0x197   :  { %v634_v39 = vsub.f32 %v77_v21, %v174_v38 }
 0x199   :  { %v186_v40 = vmul.f32 %v634_v39, %v634_v39 }
 0x19b   :  { %472 = vmatmul.msk.f32.gmra.mxu3 %vm90_vm2, %v186_v40 }
 0x19e   :  { %v177_v41 = vpop.f32.mrf.mxu2 }
 0x19f   :  { %v639_v42 = vsub.f32 %v80_v23, %v177_v41 }
 0x1a1   :  { %v187_v43 = vmul.f32 %v639_v42, %v639_v42 }
 0x1a3   :  { %473 = vmatmul.msk.f32.gmra.mxu3 %vm90_vm2, %v187_v43 }
 0x20e   :  { %v217_v44 = vpop.f32.mrf.mxu3 }
 0x20f   :  { %v229_v45 = vmul.f32 0.25, %v217_v44 }
 0x211   :  { %474 = vmatmul.msk.f32.vlgmr.msrb.gmra.mxu0 %vm138_vm3, %v229_v45 }
 0x216   :  { %v220_v46 = vpop.f32.mrf.mxu3 }
 0x217   :  { %v230_v47 = vmul.f32 0.25, %v220_v46 }
 0x219   :  { %475 = vmatmul.msk.f32.gmra.mxu0 %vm138_vm3, %v230_v47 }
 0x21e   :  { %v223_v48 = vpop.f32.mrf.mxu3 }
 0x21f   :  { %v231_v49 = vmul.f32 0.25, %v223_v48 }
 0x221   :  { %476 = vmatmul.msk.f32.gmra.mxu0 %vm138_vm3, %v231_v49 }
 0x226   :  { %v226_v50 = vpop.f32.mrf.mxu3 }
 0x227   :  { %v232_v51 = vmul.f32 0.25, %v226_v50 }
 0x229   :  { %477 = vmatmul.msk.f32.gmra.mxu0 %vm138_vm3, %v232_v51 }
 0x28e   :  { %v262_v52 = vpop.f32.mrf.mxu0 }
 0x28f   :  { %v263_v53 = vadd.f32 1e-05, %v262_v52 }
 0x291   :  { %488 = vrsqrt.f32 %v263_v53  ;;  %vm280_vm5 = vweird.f32 %v263_v53 }
 0x296   :  { %v265_v54 = vpop.f32.mrf.mxu0 }
 0x297   :  { %v489_v55 = vpop.eup %488  ;;  %v266_v56 = vadd.f32 1e-05, %v265_v54 }
 0x298   :  { %v275_v57 = vmul.f32 %v489_v55, %v263_v53  ;;  %vm281_vm4 = vweird.f32 %v489_v55 }
 0x299   :  { %490 = vrsqrt.f32 %v266_v56  ;;  %vm282_vm6 = vmor %vm280_vm5, %vm281_vm4  ;;  %vm290_vm10 = vweird.f32 %v266_v56 }
 0x29a   :  { %v276_v58 = vmul.f32 %v489_v55, %v275_v57 }
 0x29c   :  { %v277_v59 = vmul.f32 0.5, %v276_v58 }
 0x29e   :  { %v278_v60 = vsub.f32 1.5, %v277_v59  ;;  %v268_v61 = vpop.f32.mrf.mxu0 }
 0x29f   :  { %v491_v62 = vpop.eup %490  ;;  %v269_v63 = vadd.f32 1e-05, %v268_v61 }
 0x2a0   :  { %v279_v0 = vmul.f32 %v489_v55, %v278_v60  ;;  %v285_v1 = vmul.f32 %v491_v62, %v266_v56  ;;  %vm291_vm7 = vweird.f32 %v491_v62 }
 0x2a1   :  { %492 = vrsqrt.f32 %v269_v63  ;;  %vm292_vm11 = vmor %vm290_vm10, %vm291_vm7  ;;  %vm300_vm13 = vweird.f32 %v269_v63 }
 0x2a2   :  { %v283_v3 = vsel %vm282_vm6, %v489_v55, %v279_v0  ;;  %v286_v4 = vmul.f32 %v491_v62, %v285_v1 }
 0x2a3   :  { %v314_v5 = vmul.f32 %v283_v3, %v180_v33 }
 0x2a4   :  { %v287_v7 = vmul.f32 0.5, %v286_v4 }
 0x2a5   :  { %v322_v8 = vmul.f32 %v651_v2, %v314_v5 }
 0x2a6   :  { %v288_v9 = vsub.f32 1.5, %v287_v7  ;;  %v271_v10 = vpop.f32.mrf.mxu0 }
 0x2a7   :  { %v493_v11 = vpop.eup %492  ;;  %v272_v12 = vadd.f32 1e-05, %v271_v10  ;;  %v330_v13 = vadd.f32 %v487_v6, %v322_v8 }
 0x2a8   :  { %v289_v14 = vmul.f32 %v491_v62, %v288_v9  ;;  %v295_v15 = vmul.f32 %v493_v11, %v269_v63  ;;  %vm301_vm12 = vweird.f32 %v493_v11 }
 0x2a9   :  { %494 = vrsqrt.f32 %v272_v12  ;;  %383 = vrot.lane.b32.xlu2 %v330_v13, %s522_s3  ;;  %335 = vst.msk [vmem:[#allocation2] sm:$0xf] %vm334_vm8, %v330_v13  ;;  %352 = vrot.lane.b32.xlu0 %v330_v13, %s523_s4  ;;  %vm302_vm14 = vmor %vm300_vm13, %vm301_vm12  ;;  %vm310_vm0 = vweird.f32 %v272_v12 }
 0x2aa   :  { %v293_v16 = vsel %vm292_vm11, %v491_v62, %v289_v14  ;;  %v296_v17 = vmul.f32 %v493_v11, %v295_v15  ;;  %338 = vst.msk [vmem:[#allocation2 + $0xc] sm:$0xf0] %vm337_vm9, %v330_v13 }
 0x2ab   :  { %v315_v18 = vmul.f32 %v293_v16, %v629_v36 }
 0x2ac   :  { %v297_v19 = vmul.f32 0.5, %v296_v17 }
 0x2ad   :  { %v323_v20 = vmul.f32 %v651_v2, %v315_v18 }
 0x2ae   :  { %v298_v21 = vsub.f32 1.5, %v297_v19 }
 0x2af   :  { %v495_v22 = vpop.eup %494  ;;  %v331_v23 = vadd.f32 %v487_v6, %v323_v20 }
 0x2b0   :  { %v299_v24 = vmul.f32 %v493_v11, %v298_v21  ;;  %v305_v25 = vmul.f32 %v495_v22, %v272_v12  ;;  %vm311_vm15 = vweird.f32 %v495_v22 }
 0x2b1   :  { %411 = vrot.lane.b32.xlu2 %v330_v13, %s524_s1  ;;  %360 = vrot.lane.b32.xlu0 %v331_v23, %s523_s4  ;;  %340 = vst.msk [vmem:[#allocation2 + $0x20] sm:$0xf] %vm334_vm8, %v331_v23  ;;  %vm312_vm1 = vmor %vm310_vm0, %vm311_vm15 }
 0x2b2   :  { %v303_v26 = vsel %vm302_vm14, %v493_v11, %v299_v24  ;;  %v306_v27 = vmul.f32 %v495_v22, %v305_v25  ;;  %342 = vst.msk [vmem:[#allocation2 + $0x2c] sm:$0xf0] %vm337_vm9, %v331_v23 }
 0x2b3   :  { %v316_v28 = vmul.f32 %v303_v26, %v634_v39 }
 0x2b4   :  { %v307_v29 = vmul.f32 0.5, %v306_v27 }
 0x2b5   :  { %v324_v30 = vmul.f32 %v651_v2, %v316_v28 }
 0x2b6   :  { %v308_v31 = vsub.f32 1.5, %v307_v29 }
 0x2b7   :  { %v332_v32 = vadd.f32 %v487_v6, %v324_v30 }
 0x2b8   :  { %v309_v33 = vmul.f32 %v495_v22, %v308_v31 }
 0x2b9   :  { %390 = vrot.lane.b32.xlu2 %v331_v23, %s522_s3  ;;  %397 = vrot.lane.b32.xlu0 %v332_v32, %s522_s3  ;;  %344 = vst.msk [vmem:[#allocation2 + $0x40] sm:$0xf] %vm334_vm8, %v332_v32 }
 0x2ba   :  { %v313_v34 = vsel %vm312_vm1, %v495_v22, %v309_v33  ;;  %346 = vst.msk [vmem:[#allocation2 + $0x4c] sm:$0xf0] %vm337_vm9, %v332_v32  ;;  %368 = vrot.lane.b32.xlu1 %v332_v32, %s523_s4 }
 0x2bb   :  { %v317_v35 = vmul.f32 %v313_v34, %v639_v42 }
 0x2bd   :  { %v325_v36 = vmul.f32 %v651_v2, %v317_v35 }
 0x2bf   :  { %v333_v37 = vadd.f32 %v487_v6, %v325_v36 }
 0x2c1   :  { %418 = vrot.lane.b32.xlu0 %v331_v23, %s524_s1  ;;  %432 = vrot.lane.b32.xlu2 %v333_v37, %s524_s1  ;;  %348 = vst.msk [vmem:[#allocation2 + $0x60] sm:$0xf] %vm334_vm8, %v333_v37 }
 0x2c2   :  { %350 = vst.msk [vmem:[#allocation2 + $0x6c] sm:$0xf0] %vm337_vm9, %v333_v37  ;;  %376 = vrot.lane.b32.xlu1 %v333_v37, %s523_s4 }
 0x2ca   :  { %404 = vrot.lane.b32.xlu1 %v333_v37, %s522_s3 }
 0x2d2   :  { %425 = vrot.lane.b32.xlu1 %v332_v32, %s524_s1 }
 0x303   :  { %v384_v38 = vpop.permute.xlu2 %383 }
 0x304   :  { %387 = vst.msk [vmem:[#allocation2 + $0x8] sm:$0xf] %vm334_vm8, %v384_v38 }
 0x305   :  { %389 = vst.msk [vmem:[#allocation2 + $0x14] sm:$0xf0] %vm337_vm9, %v384_v38 }
 0x30b   :  { %v412_v39 = vpop.permute.xlu2 %411 }
 0x30c   :  { %415 = vst.msk [vmem:[#allocation2 + $0xc] sm:$0xf] %vm334_vm8, %v412_v39 }
 0x30d   :  { %417 = vst.msk [vmem:[#allocation2 + $0x18] sm:$0xf0] %vm337_vm9, %v412_v39 }
 0x313   :  { %v391_v40 = vpop.permute.xlu2 %390 }
 0x314   :  { %394 = vst.msk [vmem:[#allocation2 + $0x28] sm:$0xf] %vm334_vm8, %v391_v40 }
 0x315   :  { %396 = vst.msk [vmem:[#allocation2 + $0x34] sm:$0xf0] %vm337_vm9, %v391_v40 }
 0x31b   :  { %v353_v41 = vpop.permute.xlu0 %352  ;;  %v433_v42 = vpop.permute.xlu2 %432 }
 0x31c   :  { %356 = vst.msk [vmem:[#allocation2 + $0x4] sm:$0xf] %vm334_vm8, %v353_v41 }
 0x31d   :  { %358 = vst.msk [vmem:[#allocation2 + $0x10] sm:$0xf0] %vm337_vm9, %v353_v41 }
 0x31e   :  { %436 = vst.msk [vmem:[#allocation2 + $0x6c] sm:$0xf] %vm334_vm8, %v433_v42 }
 0x31f   :  { %438 = vst.msk [vmem:[#allocation2 + $0x78] sm:$0xf0] %vm337_vm9, %v433_v42 }
 0x323   :  { %v361_v43 = vpop.permute.xlu0 %360 }
 0x324   :  { %364 = vst.msk [vmem:[#allocation2 + $0x24] sm:$0xf] %vm334_vm8, %v361_v43 }
 0x325   :  { %366 = vst.msk [vmem:[#allocation2 + $0x30] sm:$0xf0] %vm337_vm9, %v361_v43 }
 0x32b   :  { %v398_v44 = vpop.permute.xlu0 %397 }
 0x32c   :  { %401 = vst.msk [vmem:[#allocation2 + $0x48] sm:$0xf] %vm334_vm8, %v398_v44  ;;  %v369_v45 = vpop.permute.xlu1 %368 }
 0x32d   :  { %403 = vst.msk [vmem:[#allocation2 + $0x54] sm:$0xf0] %vm337_vm9, %v398_v44 }
 0x32e   :  { %372 = vst.msk [vmem:[#allocation2 + $0x44] sm:$0xf] %vm334_vm8, %v369_v45 }
 0x32f   :  { %374 = vst.msk [vmem:[#allocation2 + $0x50] sm:$0xf0] %vm337_vm9, %v369_v45 }
 0x333   :  { %v419_v46 = vpop.permute.xlu0 %418 }
 0x334   :  { %422 = vst.msk [vmem:[#allocation2 + $0x2c] sm:$0xf] %vm334_vm8, %v419_v46  ;;  %v377_v47 = vpop.permute.xlu1 %376 }
 0x335   :  { %424 = vst.msk [vmem:[#allocation2 + $0x38] sm:$0xf0] %vm337_vm9, %v419_v46 }
 0x336   :  { %380 = vst.msk [vmem:[#allocation2 + $0x64] sm:$0xf] %vm334_vm8, %v377_v47 }
 0x337   :  { %382 = vst.msk [vmem:[#allocation2 + $0x70] sm:$0xf0] %vm337_vm9, %v377_v47 }
 0x33c   :  { %v405_v48 = vpop.permute.xlu1 %404 }
 0x33d   :  { %408 = vst.msk [vmem:[#allocation2 + $0x68] sm:$0xf] %vm334_vm8, %v405_v48 }
 0x33e   :  { %410 = vst.msk [vmem:[#allocation2 + $0x74] sm:$0xf0] %vm337_vm9, %v405_v48 }
 0x344   :  { %v426_v49 = vpop.permute.xlu1 %425 }
 0x345   :  { %429 = vst.msk [vmem:[#allocation2 + $0x4c] sm:$0xf] %vm334_vm8, %v426_v49 }
 0x346   :  { %431 = vst.msk [vmem:[#allocation2 + $0x58] sm:$0xf0] %vm337_vm9, %v426_v49 }
 0x347   :  { %451 = dma.vmem_to_hbm [thread:$0]  %s444_s10, 2048, %s446_s13, [#allocation3], %s526_s14, %s526_s14, %s527_s15  }
 0x348   :  { %520 = dma.done.wait [#allocation3], 2048  }
 0x349   :  { %521 = vsyncadd [#allocation3], 4294965248 }
 0x34a   :  { %456 = vsyncpa [#allocation3], 1 }

</bundles_post_ra>
